<compile_context>
chip_gen: v6e
topology: v6e:2x2x1
jax: 0.10.0
libtpu: 0.0.40
codegen_flags: <defaults>
</compile_context>

<pallas_src>
import jax
import jax.numpy as jnp
from jax import lax
from jax.experimental import pallas as pl
from jax.experimental.pallas import tpu as pltpu

D_MODEL = 32
N_HEAD = 4
DIM_HEAD = D_MODEL // N_HEAD
EPS = 1e-5
SCALE = DIM_HEAD ** -0.5


# ---------------------------------------------------------------------------
# Fused kernel: residual-add + RMSNorm + multi-head cross attention + out-proj
# Whole problem handled in a single grid step; all operands resident in VMEM.
# ---------------------------------------------------------------------------
def _make_fused_kernel(B, L, S, H, dh, has_res, has_ctx, eps):
    HD = H * dh

    def kernel(*refs):
        refs = list(refs)
        x_ref = refs.pop(0)                                   # (B*L, D)
        res_ref = refs.pop(0) if has_res else None            # (B*L, D)
        w_ref = refs.pop(0)                                   # (1, D)
        if has_ctx:
            ctx_ref = refs.pop(0)                             # (B*S, D)
            wq_ref, wkv_ref, wo_ref, out_ref, resout_ref = refs
        else:
            ctx_ref = None
            wqkv_ref, wo_ref, out_ref, resout_ref = refs

        # ---- fused add + RMSNorm (prenorm, residual in fp32) ----
        total = x_ref[...].astype(jnp.float32)
        if has_res:
            total = total + res_ref[...].astype(jnp.float32)
        resout_ref[...] = total

        var = jnp.mean(total * total, axis=-1, keepdims=True)
        h = total * lax.rsqrt(var + eps) * w_ref[...]          # (B*L, D)

        # ---- projections (Wq pre-scaled by softmax scale in the wrapper) ----
        if has_ctx:
            c = ctx_ref[...].astype(jnp.float32)               # (B*S, D)
            q_all = jnp.dot(h, wq_ref[...],
                            preferred_element_type=jnp.float32)    # (B*L, H*dh)
            kv_all = jnp.dot(c, wkv_ref[...],
                             preferred_element_type=jnp.float32)   # (B*S, 2*H*dh)
            k_all = kv_all[:, :HD]
            v_all = kv_all[:, HD:]
        else:
            # self-attention: one fused Q|K|V matmul over the normed activations
            qkv = jnp.dot(h, wqkv_ref[...],
                          preferred_element_type=jnp.float32)      # (B*L, 3*H*dh)
            q_all = qkv[:, :HD]
            k_all = qkv[:, HD:2 * HD]
            v_all = qkv[:, 2 * HD:]

        q3 = q_all.reshape(B, L, HD)
        k3 = k_all.reshape(B, S, HD)
        v3 = v_all.reshape(B, S, HD)

        # ---- attention, batched over B, heads unrolled (H is small) ----
        o_heads = []
        for hi in range(H):
            sl = slice(hi * dh, (hi + 1) * dh)
            s = jnp.einsum("ble,bse->bls", q3[:, :, sl], k3[:, :, sl],
                           preferred_element_type=jnp.float32)     # (B, L, S)
            s = s - jnp.max(s, axis=-1, keepdims=True)
            p = jnp.exp(s)
            p = p * pl.reciprocal(jnp.sum(p, axis=-1, keepdims=True), approx=False)
            o_heads.append(jnp.einsum("bls,bse->ble", p, v3[:, :, sl],
                                      preferred_element_type=jnp.float32))

        o = jnp.concatenate(o_heads, axis=-1).reshape(B * L, HD)
        out_ref[...] = jnp.dot(o, wo_ref[...],
                               preferred_element_type=jnp.float32)  # (B*L, D)

    return kernel


# ---------------------------------------------------------------------------
# Wrapper = FlashCrossAttentionWrapper.forward
# ---------------------------------------------------------------------------
def flash_cross_attention_wrapper(hidden_states, context, residual, params):
    B, L, D = hidden_states.shape
    H, _, dh = params["wq"].shape
    has_res = residual is not None
    has_ctx = context is not None
    S = context.shape[1] if has_ctx else L
    scale = float(dh) ** -0.5

    # Pack weights (wrapper-side, one-time layout prep; would be done at init
    # in a real model): per-head (H, D, dh) -> (D, H*dh); Wq pre-scaled; Q|K|V
    # fused for the self-attn path, K|V fused for the cross-attn path.
    wq_flat = jnp.transpose(params["wq"], (1, 0, 2)).reshape(D, H * dh) * scale
    wk_flat = jnp.transpose(params["wk"], (1, 0, 2)).reshape(D, H * dh)
    wv_flat = jnp.transpose(params["wv"], (1, 0, 2)).reshape(D, H * dh)
    wo_flat = params["wo"].reshape(H * dh, D)                      # (H*dh, D)
    norm_w = params["norm_weight"].reshape(1, D).astype(jnp.float32)

    # Flatten batch*seq so projections are single wide matmuls.
    inputs = [hidden_states.reshape(B * L, D)]
    in_specs = [pl.BlockSpec((B * L, D), lambda i: (0, 0))]
    if has_res:
        inputs.append(residual.reshape(B * L, D))
        in_specs.append(pl.BlockSpec((B * L, D), lambda i: (0, 0)))
    inputs.append(norm_w)
    in_specs.append(pl.BlockSpec((1, D), lambda i: (0, 0)))
    if has_ctx:
        inputs.append(context.reshape(B * S, D))
        in_specs.append(pl.BlockSpec((B * S, D), lambda i: (0, 0)))
        wkv_flat = jnp.concatenate([wk_flat, wv_flat], axis=-1)    # (D, 2*H*dh)
        inputs += [wq_flat, wkv_flat]
        in_specs += [pl.BlockSpec((D, H * dh), lambda i: (0, 0)),
                     pl.BlockSpec((D, 2 * H * dh), lambda i: (0, 0))]
    else:
        wqkv_flat = jnp.concatenate([wq_flat, wk_flat, wv_flat], axis=-1)
        inputs.append(wqkv_flat)                                   # (D, 3*H*dh)
        in_specs.append(pl.BlockSpec((D, 3 * H * dh), lambda i: (0, 0)))
    inputs.append(wo_flat)
    in_specs.append(pl.BlockSpec((H * dh, D), lambda i: (0, 0)))

    kernel = _make_fused_kernel(B, L, S, H, dh, has_res, has_ctx, EPS)

    out2, resout2 = pl.pallas_call(
        kernel,
        out_shape=(jax.ShapeDtypeStruct((B * L, D), jnp.float32),
                   jax.ShapeDtypeStruct((B * L, D), jnp.float32)),
        grid=(1,),
        in_specs=in_specs,
        out_specs=(pl.BlockSpec((B * L, D), lambda i: (0, 0)),
                   pl.BlockSpec((B * L, D), lambda i: (0, 0))),
        compiler_params=pltpu.CompilerParams(dimension_semantics=("arbitrary",)),
    )(*inputs)

    return out2.reshape(B, L, D), resout2.reshape(B, L, D)


# ---------------------------------------------------------------------------
# Pure-JAX reference (for correctness checking)
# ---------------------------------------------------------------------------
def _reference(hidden_states, context, residual, params):
    res = hidden_states.astype(jnp.float32)
    if residual is not None:
        res = res + residual.astype(jnp.float32)
    inv = lax.rsqrt(jnp.mean(res * res, axis=-1, keepdims=True) + EPS)
    h = res * inv * params["norm_weight"]
    ctx = context if context is not None else h
    q = jnp.einsum("bld,hde->bhle", h, params["wq"]) * SCALE
    k = jnp.einsum("bsd,hde->bhse", ctx, params["wk"])
    v = jnp.einsum("bsd,hde->bhse", ctx, params["wv"])
    s = jnp.einsum("bhle,bhse->bhls", q, k)
    p = jax.nn.softmax(s, axis=-1)
    o = jnp.einsum("bhls,bhse->bhle", p, v)
    out = jnp.einsum("bhle,hed->bld", o, params["wo"])
    return out, res


if __name__ == "__main__":
    B, L, S = 2, 8, 8
    D, H, dh = D_MODEL, N_HEAD, DIM_HEAD

    key = jax.random.PRNGKey(0)
    k0, k1, k2, k3, k4, k5, k6, k7 = jax.random.split(key, 8)

    hidden_states = jax.random.normal(k0, (B, L, D), jnp.float32)
    residual = jax.random.normal(k1, (B, L, D), jnp.float32)
    context = jax.random.normal(k2, (B, S, D), jnp.float32)

    w_init = 1.0 / (D ** 0.5)
    params = {
        "norm_weight": 1.0 + 0.02 * jax.random.normal(k3, (D,), jnp.float32),
        # per-head projection weights: (H, D, dh) for q/k/v, (H, dh, D) for out
        "wq": w_init * jax.random.normal(k4, (H, D, dh), jnp.float32),
        "wk": w_init * jax.random.normal(k5, (H, D, dh), jnp.float32),
        "wv": w_init * jax.random.normal(k6, (H, D, dh), jnp.float32),
        "wo": w_init * jax.random.normal(k7, (H, dh, D), jnp.float32),
    }

    # --- case 1: residual and context provided (cross attention) ---
    out, res_out = flash_cross_attention_wrapper(hidden_states, context,
                                                 residual, params)
    out = jax.block_until_ready(out)
    res_out = jax.block_until_ready(res_out)
    ref_out, ref_res = _reference(hidden_states, context, residual, params)
    assert jnp.allclose(out, ref_out, rtol=2e-4, atol=2e-4), "attention mismatch"
    assert jnp.allclose(res_out, ref_res, rtol=1e-5, atol=1e-5), "residual mismatch"

    # --- case 2: residual=None, context=None (self attention, fused QKV matmul) ---
    out2, res_out2 = flash_cross_attention_wrapper(hidden_states, None, None,
                                                   params)
    out2 = jax.block_until_ready(out2)
    res_out2 = jax.block_until_ready(res_out2)
    ref_out2, ref_res2 = _reference(hidden_states, None, None, params)
    assert jnp.allclose(out2, ref_out2, rtol=2e-4, atol=2e-4), "self-attn mismatch"
    assert jnp.allclose(res_out2, ref_res2, rtol=1e-5, atol=1e-5), "self-attn residual mismatch"

    print("KERNEL_OK")
</pallas_src>

<mosaic_0001>
module attributes {stable_mosaic.version = 11 : i64} {
  func.func @kernel(%arg0: i32, %arg1: memref<16x32xf32, #tpu.memory_space<vmem>>, %arg2: memref<16x32xf32, #tpu.memory_space<vmem>>, %arg3: memref<1x32xf32, #tpu.memory_space<vmem>>, %arg4: memref<16x32xf32, #tpu.memory_space<vmem>>, %arg5: memref<32x32xf32, #tpu.memory_space<vmem>>, %arg6: memref<32x64xf32, #tpu.memory_space<vmem>>, %arg7: memref<32x32xf32, #tpu.memory_space<vmem>>, %arg8: memref<16x32xf32, #tpu.memory_space<vmem>>, %arg9: memref<16x32xf32, #tpu.memory_space<vmem>>) attributes {dimension_semantics = [#tpu.dimension_semantics<arbitrary>], iteration_bounds = array<i64: 1>, scalar_prefetch = 0 : i64, scratch_operands = 0 : i64, tpu.core_type = #tpu.core_type<tc>, window_params = [{pipeline_mode = #tpu.pipeline_mode<synchronous>, transform_indices = @transform_0, window_bounds = array<i64: 16, 32>}, {pipeline_mode = #tpu.pipeline_mode<synchronous>, transform_indices = @transform_1, window_bounds = array<i64: 16, 32>}, {pipeline_mode = #tpu.pipeline_mode<synchronous>, transform_indices = @transform_2, window_bounds = array<i64: 1, 32>}, {pipeline_mode = #tpu.pipeline_mode<synchronous>, transform_indices = @transform_3, window_bounds = array<i64: 16, 32>}, {pipeline_mode = #tpu.pipeline_mode<synchronous>, transform_indices = @transform_4, window_bounds = array<i64: 32, 32>}, {pipeline_mode = #tpu.pipeline_mode<synchronous>, transform_indices = @transform_5, window_bounds = array<i64: 32, 64>}, {pipeline_mode = #tpu.pipeline_mode<synchronous>, transform_indices = @transform_6, window_bounds = array<i64: 32, 32>}, {pipeline_mode = #tpu.pipeline_mode<synchronous>, transform_indices = @transform_7, window_bounds = array<i64: 16, 32>}, {pipeline_mode = #tpu.pipeline_mode<synchronous>, transform_indices = @transform_8, window_bounds = array<i64: 16, 32>}]} {
    %c0 = arith.constant 0 : index
    %c0_0 = arith.constant 0 : index
    %0 = vector.load %arg1[%c0, %c0_0] : memref<16x32xf32, #tpu.memory_space<vmem>>, vector<16x32xf32>
    %c0_1 = arith.constant 0 : index
    %c0_2 = arith.constant 0 : index
    %1 = vector.load %arg2[%c0_1, %c0_2] : memref<16x32xf32, #tpu.memory_space<vmem>>, vector<16x32xf32>
    %2 = arith.addf %0, %1 : vector<16x32xf32>
    %c0_3 = arith.constant 0 : index
    %c0_4 = arith.constant 0 : index
    %3 = vector.load %arg9[%c0_3, %c0_4] : memref<16x32xf32, #tpu.memory_space<vmem>>, vector<16x32xf32>
    tpu.vector_store %arg9[%c0_3, %c0_4], %2 {strides = array<i32>} : memref<16x32xf32, #tpu.memory_space<vmem>>, vector<16x32xf32>,
    %4 = arith.mulf %2, %2 : vector<16x32xf32>
    %cst = arith.constant dense<0.000000e+00> : vector<16xf32>
    %5 = vector.multi_reduction <add>, %4, %cst [1] : vector<16x32xf32> to vector<16xf32>
    %6 = vector.shape_cast %5 : vector<16xf32> to vector<16x1xf32>
    %cst_5 = arith.constant 3.200000e+01 : f32
    %7 = vector.broadcast %cst_5 : f32 to vector<16x1xf32>
    %8 = arith.divf %6, %7 : vector<16x1xf32>
    %cst_6 = arith.constant 9.99999974E-6 : f32
    %9 = vector.broadcast %cst_6 : f32 to vector<16x1xf32>
    %10 = arith.addf %8, %9 : vector<16x1xf32>
    %11 = math.rsqrt %10 : vector<16x1xf32>
    %12 = vector.broadcast %11 : vector<16x1xf32> to vector<16x32xf32>
    %13 = arith.mulf %2, %12 : vector<16x32xf32>
    %c0_7 = arith.constant 0 : index
    %c0_8 = arith.constant 0 : index
    %14 = vector.load %arg3[%c0_7, %c0_8] : memref<1x32xf32, #tpu.memory_space<vmem>>, vector<1x32xf32>
    %15 = vector.broadcast %14 : vector<1x32xf32> to vector<16x32xf32>
    %16 = arith.mulf %13, %15 : vector<16x32xf32>
    %c0_9 = arith.constant 0 : index
    %c0_10 = arith.constant 0 : index
    %17 = vector.load %arg4[%c0_9, %c0_10] : memref<16x32xf32, #tpu.memory_space<vmem>>, vector<16x32xf32>
    %c0_11 = arith.constant 0 : index
    %c0_12 = arith.constant 0 : index
    %18 = vector.load %arg5[%c0_11, %c0_12] : memref<32x32xf32, #tpu.memory_space<vmem>>, vector<32x32xf32>
    %cst_13 = arith.constant dense<0.000000e+00> : vector<16x32xf32>
    %19 = tpu.matmul %16, %18, %cst_13 {dimension_numbers = #tpu.dot_dimension_numbers<[1], [0], [0], [1], [0, 0, 1, 1], [], []>} : vector<16x32xf32>, vector<32x32xf32>, vector<16x32xf32> -> vector<16x32xf32>
    %c0_14 = arith.constant 0 : index
    %c0_15 = arith.constant 0 : index
    %20 = vector.load %arg6[%c0_14, %c0_15] : memref<32x64xf32, #tpu.memory_space<vmem>>, vector<32x64xf32>
    %cst_16 = arith.constant dense<0.000000e+00> : vector<16x64xf32>
    %21 = tpu.matmul %17, %20, %cst_16 {dimension_numbers = #tpu.dot_dimension_numbers<[1], [0], [0], [1], [0, 0, 1, 1], [], []>} : vector<16x32xf32>, vector<32x64xf32>, vector<16x64xf32> -> vector<16x64xf32>
    %22 = vector.extract_strided_slice %21 {offsets = [0, 0], sizes = [16, 32], strides = [1, 1]} : vector<16x64xf32> to vector<16x32xf32>
    %23 = vector.extract_strided_slice %21 {offsets = [0, 32], sizes = [16, 32], strides = [1, 1]} : vector<16x64xf32> to vector<16x32xf32>
    %24 = vector.shape_cast %19 : vector<16x32xf32> to vector<2x8x32xf32>
    %25 = vector.shape_cast %22 : vector<16x32xf32> to vector<2x8x32xf32>
    %26 = vector.shape_cast %23 : vector<16x32xf32> to vector<2x8x32xf32>
    %27 = vector.extract_strided_slice %24 {offsets = [0, 0, 0], sizes = [2, 8, 8], strides = [1, 1, 1]} : vector<2x8x32xf32> to vector<2x8x8xf32>
    %28 = vector.extract_strided_slice %25 {offsets = [0, 0, 0], sizes = [2, 8, 8], strides = [1, 1, 1]} : vector<2x8x32xf32> to vector<2x8x8xf32>
    "tpu.trace_start"() <{level = 10 : i32, message = "ble,bse->bls"}> : () -> ()
    %cst_17 = arith.constant dense<0.000000e+00> : vector<2x8x8xf32>
    %29 = tpu.matmul %27, %28, %cst_17 {dimension_numbers = #tpu.dot_dimension_numbers<[2], [2], [1], [1], [0, 0, 0, 1, 1, 1], [0], [0]>} : vector<2x8x8xf32>, vector<2x8x8xf32>, vector<2x8x8xf32> -> vector<2x8x8xf32>
    "tpu.trace_stop"() : () -> ()
    %cst_18 = arith.constant dense<0xFF800000> : vector<2x8xf32>
    %30 = vector.multi_reduction <maximumf>, %29, %cst_18 [2] : vector<2x8x8xf32> to vector<2x8xf32>
    %31 = vector.shape_cast %30 : vector<2x8xf32> to vector<2x8x1xf32>
    %32 = vector.broadcast %31 : vector<2x8x1xf32> to vector<2x8x8xf32>
    %33 = arith.subf %29, %32 : vector<2x8x8xf32>
    %34 = math.exp %33 : vector<2x8x8xf32>
    %cst_19 = arith.constant dense<0.000000e+00> : vector<2x8xf32>
    %35 = vector.multi_reduction <add>, %34, %cst_19 [2] : vector<2x8x8xf32> to vector<2x8xf32>
    %36 = vector.shape_cast %35 : vector<2x8xf32> to vector<2x8x1xf32>
    %37 = tpu.reciprocal %36 : vector<2x8x1xf32> -> vector<2x8x1xf32>
    %38 = vector.broadcast %37 : vector<2x8x1xf32> to vector<2x8x8xf32>
    %39 = arith.mulf %34, %38 : vector<2x8x8xf32>
    %40 = vector.extract_strided_slice %26 {offsets = [0, 0, 0], sizes = [2, 8, 8], strides = [1, 1, 1]} : vector<2x8x32xf32> to vector<2x8x8xf32>
    "tpu.trace_start"() <{level = 10 : i32, message = "bls,bse->ble"}> : () -> ()
    %cst_20 = arith.constant dense<0.000000e+00> : vector<2x8x8xf32>
    %41 = tpu.matmul %39, %40, %cst_20 {dimension_numbers = #tpu.dot_dimension_numbers<[2], [1], [1], [2], [0, 0, 0, 1, 1, 2], [0], [0]>} : vector<2x8x8xf32>, vector<2x8x8xf32>, vector<2x8x8xf32> -> vector<2x8x8xf32>
    "tpu.trace_stop"() : () -> ()
    %42 = vector.extract_strided_slice %24 {offsets = [0, 0, 8], sizes = [2, 8, 8], strides = [1, 1, 1]} : vector<2x8x32xf32> to vector<2x8x8xf32>
    %43 = vector.extract_strided_slice %25 {offsets = [0, 0, 8], sizes = [2, 8, 8], strides = [1, 1, 1]} : vector<2x8x32xf32> to vector<2x8x8xf32>
    "tpu.trace_start"() <{level = 10 : i32, message = "ble,bse->bls"}> : () -> ()
    %cst_21 = arith.constant dense<0.000000e+00> : vector<2x8x8xf32>
    %44 = tpu.matmul %42, %43, %cst_21 {dimension_numbers = #tpu.dot_dimension_numbers<[2], [2], [1], [1], [0, 0, 0, 1, 1, 1], [0], [0]>} : vector<2x8x8xf32>, vector<2x8x8xf32>, vector<2x8x8xf32> -> vector<2x8x8xf32>
    "tpu.trace_stop"() : () -> ()
    %cst_22 = arith.constant dense<0xFF800000> : vector<2x8xf32>
    %45 = vector.multi_reduction <maximumf>, %44, %cst_22 [2] : vector<2x8x8xf32> to vector<2x8xf32>
    %46 = vector.shape_cast %45 : vector<2x8xf32> to vector<2x8x1xf32>
    %47 = vector.broadcast %46 : vector<2x8x1xf32> to vector<2x8x8xf32>
    %48 = arith.subf %44, %47 : vector<2x8x8xf32>
    %49 = math.exp %48 : vector<2x8x8xf32>
    %cst_23 = arith.constant dense<0.000000e+00> : vector<2x8xf32>
    %50 = vector.multi_reduction <add>, %49, %cst_23 [2] : vector<2x8x8xf32> to vector<2x8xf32>
    %51 = vector.shape_cast %50 : vector<2x8xf32> to vector<2x8x1xf32>
    %52 = tpu.reciprocal %51 : vector<2x8x1xf32> -> vector<2x8x1xf32>
    %53 = vector.broadcast %52 : vector<2x8x1xf32> to vector<2x8x8xf32>
    %54 = arith.mulf %49, %53 : vector<2x8x8xf32>
    %55 = vector.extract_strided_slice %26 {offsets = [0, 0, 8], sizes = [2, 8, 8], strides = [1, 1, 1]} : vector<2x8x32xf32> to vector<2x8x8xf32>
    "tpu.trace_start"() <{level = 10 : i32, message = "bls,bse->ble"}> : () -> ()
    %cst_24 = arith.constant dense<0.000000e+00> : vector<2x8x8xf32>
    %56 = tpu.matmul %54, %55, %cst_24 {dimension_numbers = #tpu.dot_dimension_numbers<[2], [1], [1], [2], [0, 0, 0, 1, 1, 2], [0], [0]>} : vector<2x8x8xf32>, vector<2x8x8xf32>, vector<2x8x8xf32> -> vector<2x8x8xf32>
    "tpu.trace_stop"() : () -> ()
    %57 = vector.extract_strided_slice %24 {offsets = [0, 0, 16], sizes = [2, 8, 8], strides = [1, 1, 1]} : vector<2x8x32xf32> to vector<2x8x8xf32>
    %58 = vector.extract_strided_slice %25 {offsets = [0, 0, 16], sizes = [2, 8, 8], strides = [1, 1, 1]} : vector<2x8x32xf32> to vector<2x8x8xf32>
    "tpu.trace_start"() <{level = 10 : i32, message = "ble,bse->bls"}> : () -> ()
    %cst_25 = arith.constant dense<0.000000e+00> : vector<2x8x8xf32>
    %59 = tpu.matmul %57, %58, %cst_25 {dimension_numbers = #tpu.dot_dimension_numbers<[2], [2], [1], [1], [0, 0, 0, 1, 1, 1], [0], [0]>} : vector<2x8x8xf32>, vector<2x8x8xf32>, vector<2x8x8xf32> -> vector<2x8x8xf32>
    "tpu.trace_stop"() : () -> ()
    %cst_26 = arith.constant dense<0xFF800000> : vector<2x8xf32>
    %60 = vector.multi_reduction <maximumf>, %59, %cst_26 [2] : vector<2x8x8xf32> to vector<2x8xf32>
    %61 = vector.shape_cast %60 : vector<2x8xf32> to vector<2x8x1xf32>
    %62 = vector.broadcast %61 : vector<2x8x1xf32> to vector<2x8x8xf32>
    %63 = arith.subf %59, %62 : vector<2x8x8xf32>
    %64 = math.exp %63 : vector<2x8x8xf32>
    %cst_27 = arith.constant dense<0.000000e+00> : vector<2x8xf32>
    %65 = vector.multi_reduction <add>, %64, %cst_27 [2] : vector<2x8x8xf32> to vector<2x8xf32>
    %66 = vector.shape_cast %65 : vector<2x8xf32> to vector<2x8x1xf32>
    %67 = tpu.reciprocal %66 : vector<2x8x1xf32> -> vector<2x8x1xf32>
    %68 = vector.broadcast %67 : vector<2x8x1xf32> to vector<2x8x8xf32>
    %69 = arith.mulf %64, %68 : vector<2x8x8xf32>
    %70 = vector.extract_strided_slice %26 {offsets = [0, 0, 16], sizes = [2, 8, 8], strides = [1, 1, 1]} : vector<2x8x32xf32> to vector<2x8x8xf32>
    "tpu.trace_start"() <{level = 10 : i32, message = "bls,bse->ble"}> : () -> ()
    %cst_28 = arith.constant dense<0.000000e+00> : vector<2x8x8xf32>
    %71 = tpu.matmul %69, %70, %cst_28 {dimension_numbers = #tpu.dot_dimension_numbers<[2], [1], [1], [2], [0, 0, 0, 1, 1, 2], [0], [0]>} : vector<2x8x8xf32>, vector<2x8x8xf32>, vector<2x8x8xf32> -> vector<2x8x8xf32>
    "tpu.trace_stop"() : () -> ()
    %72 = vector.extract_strided_slice %24 {offsets = [0, 0, 24], sizes = [2, 8, 8], strides = [1, 1, 1]} : vector<2x8x32xf32> to vector<2x8x8xf32>
    %73 = vector.extract_strided_slice %25 {offsets = [0, 0, 24], sizes = [2, 8, 8], strides = [1, 1, 1]} : vector<2x8x32xf32> to vector<2x8x8xf32>
    "tpu.trace_start"() <{level = 10 : i32, message = "ble,bse->bls"}> : () -> ()
    %cst_29 = arith.constant dense<0.000000e+00> : vector<2x8x8xf32>
    %74 = tpu.matmul %72, %73, %cst_29 {dimension_numbers = #tpu.dot_dimension_numbers<[2], [2], [1], [1], [0, 0, 0, 1, 1, 1], [0], [0]>} : vector<2x8x8xf32>, vector<2x8x8xf32>, vector<2x8x8xf32> -> vector<2x8x8xf32>
    "tpu.trace_stop"() : () -> ()
    %cst_30 = arith.constant dense<0xFF800000> : vector<2x8xf32>
    %75 = vector.multi_reduction <maximumf>, %74, %cst_30 [2] : vector<2x8x8xf32> to vector<2x8xf32>
    %76 = vector.shape_cast %75 : vector<2x8xf32> to vector<2x8x1xf32>
    %77 = vector.broadcast %76 : vector<2x8x1xf32> to vector<2x8x8xf32>
    %78 = arith.subf %74, %77 : vector<2x8x8xf32>
    %79 = math.exp %78 : vector<2x8x8xf32>
    %cst_31 = arith.constant dense<0.000000e+00> : vector<2x8xf32>
    %80 = vector.multi_reduction <add>, %79, %cst_31 [2] : vector<2x8x8xf32> to vector<2x8xf32>
    %81 = vector.shape_cast %80 : vector<2x8xf32> to vector<2x8x1xf32>
    %82 = tpu.reciprocal %81 : vector<2x8x1xf32> -> vector<2x8x1xf32>
    %83 = vector.broadcast %82 : vector<2x8x1xf32> to vector<2x8x8xf32>
    %84 = arith.mulf %79, %83 : vector<2x8x8xf32>
    %85 = vector.extract_strided_slice %26 {offsets = [0, 0, 24], sizes = [2, 8, 8], strides = [1, 1, 1]} : vector<2x8x32xf32> to vector<2x8x8xf32>
    "tpu.trace_start"() <{level = 10 : i32, message = "bls,bse->ble"}> : () -> ()
    %cst_32 = arith.constant dense<0.000000e+00> : vector<2x8x8xf32>
    %86 = tpu.matmul %84, %85, %cst_32 {dimension_numbers = #tpu.dot_dimension_numbers<[2], [1], [1], [2], [0, 0, 0, 1, 1, 2], [0], [0]>} : vector<2x8x8xf32>, vector<2x8x8xf32>, vector<2x8x8xf32> -> vector<2x8x8xf32>
    "tpu.trace_stop"() : () -> ()
    %87 = tpu.concatenate %41, %56, %71, %86 in 2 : vector<2x8x8xf32>, vector<2x8x8xf32>, vector<2x8x8xf32>, vector<2x8x8xf32> -> vector<2x8x32xf32>
    %88 = vector.shape_cast %87 : vector<2x8x32xf32> to vector<16x32xf32>
    %c0_33 = arith.constant 0 : index
    %c0_34 = arith.constant 0 : index
    %89 = vector.load %arg7[%c0_33, %c0_34] : memref<32x32xf32, #tpu.memory_space<vmem>>, vector<32x32xf32>
    %cst_35 = arith.constant dense<0.000000e+00> : vector<16x32xf32>
    %90 = tpu.matmul %88, %89, %cst_35 {dimension_numbers = #tpu.dot_dimension_numbers<[1], [0], [0], [1], [0, 0, 1, 1], [], []>} : vector<16x32xf32>, vector<32x32xf32>, vector<16x32xf32> -> vector<16x32xf32>
    %c0_36 = arith.constant 0 : index
    %c0_37 = arith.constant 0 : index
    %91 = vector.load %arg8[%c0_36, %c0_37] : memref<16x32xf32, #tpu.memory_space<vmem>>, vector<16x32xf32>
    tpu.vector_store %arg8[%c0_36, %c0_37], %90 {strides = array<i32>} : memref<16x32xf32, #tpu.memory_space<vmem>>, vector<16x32xf32>,
    return
  }
  func.func @transform_0(%arg0: i32) -> (i32, i32) {
    %c0_i32 = arith.constant 0 : i32
    %c0_i32_0 = arith.constant 0 : i32
    %c0_i32_1 = arith.constant 0 : i32
    return %c0_i32, %c0_i32_0 : i32, i32
  }
  func.func @transform_1(%arg0: i32) -> (i32, i32) {
    %c0_i32 = arith.constant 0 : i32
    %c0_i32_0 = arith.constant 0 : i32
    %c0_i32_1 = arith.constant 0 : i32
    return %c0_i32, %c0_i32_0 : i32, i32
  }
  func.func @transform_2(%arg0: i32) -> (i32, i32) {
    %c0_i32 = arith.constant 0 : i32
    %c0_i32_0 = arith.constant 0 : i32
    %c0_i32_1 = arith.constant 0 : i32
    return %c0_i32, %c0_i32_0 : i32, i32
  }
  func.func @transform_3(%arg0: i32) -> (i32, i32) {
    %c0_i32 = arith.constant 0 : i32
    %c0_i32_0 = arith.constant 0 : i32
    %c0_i32_1 = arith.constant 0 : i32
    return %c0_i32, %c0_i32_0 : i32, i32
  }
  func.func @transform_4(%arg0: i32) -> (i32, i32) {
    %c0_i32 = arith.constant 0 : i32
    %c0_i32_0 = arith.constant 0 : i32
    %c0_i32_1 = arith.constant 0 : i32
    return %c0_i32, %c0_i32_0 : i32, i32
  }
  func.func @transform_5(%arg0: i32) -> (i32, i32) {
    %c0_i32 = arith.constant 0 : i32
    %c0_i32_0 = arith.constant 0 : i32
    %c0_i32_1 = arith.constant 0 : i32
    return %c0_i32, %c0_i32_0 : i32, i32
  }
  func.func @transform_6(%arg0: i32) -> (i32, i32) {
    %c0_i32 = arith.constant 0 : i32
    %c0_i32_0 = arith.constant 0 : i32
    %c0_i32_1 = arith.constant 0 : i32
    return %c0_i32, %c0_i32_0 : i32, i32
  }
  func.func @transform_7(%arg0: i32) -> (i32, i32) {
    %c0_i32 = arith.constant 0 : i32
    %c0_i32_0 = arith.constant 0 : i32
    %c0_i32_1 = arith.constant 0 : i32
    return %c0_i32, %c0_i32_0 : i32, i32
  }
  func.func @transform_8(%arg0: i32) -> (i32, i32) {
    %c0_i32 = arith.constant 0 : i32
    %c0_i32_0 = arith.constant 0 : i32
    %c0_i32_1 = arith.constant 0 : i32
    return %c0_i32, %c0_i32_0 : i32, i32
  }
}

</mosaic_0001>

<bundles_post_ra>
// kernel: tpu_custom_call.1
= control target key start
LH: loop header
LB: loop body
LE: loop exit
PB: predicated region body
PF: predicated region fallthrough
CT: control target
= control target key end

     0   :  { %14 = vsyncpa [#allocation3], 0  ;;  %s2479_s0 = inlined_call_operand.hbm [shape: f32[16,32], index: 0, kind: input, shape index: {}]   ;;  %s2480_s1 = inlined_call_operand.hbm [shape: f32[16,32], index: 1, kind: input, shape index: {}]   ;;  %s2481_s2 = inlined_call_operand.vmem [shape: f32[1,32], index: 2, kind: input, shape index: {}]   ;;  %s2482_s3 = inlined_call_operand.hbm [shape: f32[16,32], index: 3, kind: input, shape index: {}]   ;;  %s2483_s4 = inlined_call_operand.hbm [shape: f32[32,32], index: 4, kind: input, shape index: {}]   ;;  %s2484_s5 = inlined_call_operand.hbm [shape: f32[32,64], index: 5, kind: input, shape index: {}]   ;;  %s2485_s6 = inlined_call_operand.hbm [shape: f32[32,32], index: 6, kind: input, shape index: {}]   ;;  %s2486_s7 = inlined_call_operand.hbm [shape: f32[16,32], index: 7, kind: output, shape index: {0}]   ;;  %s2487_s8 = inlined_call_operand.hbm [shape: f32[16,32], index: 8, kind: output, shape index: {1}]  }
   0x1   :  { %15 = vsyncpa [#allocation6], 0 }
   0x2   :  { %16 = vsyncpa [#allocation9], 0 }
   0x3   :  { %17 = vsyncpa [#allocation12], 0 }
   0x4   :  { %18 = vsyncpa [#allocation4], 0 }
   0x5   :  { %19 = vsyncpa [#allocation15], 0  ;;  %s2214_s27 = smov [#allocation5]   ;;  %s2215_s29 = smov [#allocation8]  }
   0x6   :  { %s37_s28 = sshll.u32 %s2214_s27, 4  ;;  %s63_s30 = sshll.u32 %s2215_s29, 4  ;;  %s38_s28 = int_to_ptr.vmem [resolvable:$true] %s37_s28  ;;  %s64_s30 = int_to_ptr.vmem [resolvable:$true] %s63_s30 }
   0x7   :  { %s2050_s9 = scalar_lea.vmem %s38_s28, 256  ;;  %p2055_p1 = scmp.lt.s32.totalorder %s38_s28, %s38_s28 }
   0x8   :  { %p2051_p0 = scmp.ne.s32.totalorder %s38_s28, %s2050_s9  ;;  %p2056_p2 = scmp.lt.s32.totalorder %s2050_s9, %s2050_s9 }
   0xa   :  { %p2057_p3 = por %p2056_p2, %p2055_p1 }
   0xc   :  { %p2058_p4 = pnand %p2057_p3, %p2051_p0 }
   0xe   :  { %2061 = shalt.err (!%p2058_p4)
}
   0xf   :  { %s2216_s10 = smov 128   ;;  %s2217_s11 = smov 8  }
  0x10   :  { %43 = dma.hbm_to_vmem [thread:$0]  %s2480_s1, 256, %s38_s28, [#allocation6], %s2216_s10, %s2216_s10, %s2217_s11  }
  0x11   :  { %s2070_s14 = scalar_lea.vmem %s64_s30, 512  ;;  %p2075_p6 = scmp.lt.s32.totalorder %s64_s30, %s64_s30 }
  0x12   :  { %p2071_p5 = scmp.ne.s32.totalorder %s64_s30, %s2070_s14  ;;  %p2076_p7 = scmp.lt.s32.totalorder %s2070_s14, %s2070_s14 }
  0x14   :  { %p2077_p8 = por %p2076_p7, %p2075_p6 }
  0x16   :  { %p2078_p9 = pnand %p2077_p8, %p2071_p5 }
  0x18   :  { %2081 = shalt.err (!%p2078_p9)
}
  0x19   :  { %69 = dma.hbm_to_vmem [thread:$0]  %s2483_s4, 512, %s64_s30, [#allocation9], %s2216_s10, %s2216_s10, %s2217_s11  }
  0x1a   :  { %s2218_s17 = smov [#allocation2]   ;;  %s2219_s19 = smov [#allocation7]  }
  0x1b   :  { %s25_s18 = sshll.u32 %s2218_s17, 4  ;;  %s51_s20 = sshll.u32 %s2219_s19, 4  ;;  %s26_s18 = int_to_ptr.vmem [resolvable:$true] %s25_s18  ;;  %s52_s20 = int_to_ptr.vmem [resolvable:$true] %s51_s20 }
  0x1c   :  { %s2090_s1 = scalar_lea.vmem %s26_s18, 256  ;;  %p2095_p11 = scmp.lt.s32.totalorder %s26_s18, %s26_s18 }
  0x1d   :  { %p2091_p10 = scmp.ne.s32.totalorder %s26_s18, %s2090_s1  ;;  %p2096_p12 = scmp.lt.s32.totalorder %s2090_s1, %s2090_s1 }
  0x1f   :  { %p2097_p13 = por %p2096_p12, %p2095_p11 }
  0x21   :  { %p2098_p0 = pnand %p2097_p13, %p2091_p10 }
  0x23   :  { %2101 = shalt.err (!%p2098_p0)
}
  0x24   :  { %31 = dma.hbm_to_vmem [thread:$0]  %s2479_s0, 256, %s26_s18, [#allocation3], %s2216_s10, %s2216_s10, %s2217_s11  }
  0x25   :  { %s2110_s4 = scalar_lea.vmem %s52_s20, 256  ;;  %p2115_p2 = scmp.lt.s32.totalorder %s52_s20, %s52_s20 }
  0x26   :  { %p2111_p1 = scmp.ne.s32.totalorder %s52_s20, %s2110_s4  ;;  %p2116_p3 = scmp.lt.s32.totalorder %s2110_s4, %s2110_s4 }
  0x28   :  { %p2117_p4 = por %p2116_p3, %p2115_p2 }
  0x2a   :  { %p2118_p5 = pnand %p2117_p4, %p2111_p1 }
  0x2c   :  { %2121 = shalt.err (!%p2118_p5)
}
  0x2d   :  { %57 = dma.hbm_to_vmem [thread:$0]  %s2482_s3, 256, %s52_s20, [#allocation6], %s2216_s10, %s2216_s10, %s2217_s11  }
  0x2e   :  { %s2220_s25 = smov [#allocation10]   ;;  %s2221_s27 = smov [#allocation11]  }
  0x2f   :  { %s75_s26 = sshll.u32 %s2220_s25, 4  ;;  %s87_s28 = sshll.u32 %s2221_s27, 4  ;;  %s76_s26 = int_to_ptr.vmem [resolvable:$true] %s75_s26  ;;  %s88_s28 = int_to_ptr.vmem [resolvable:$true] %s87_s28 }
  0x30   :  { %s2130_s0 = scalar_lea.vmem %s76_s26, 512  ;;  %p2135_p7 = scmp.lt.s32.totalorder %s76_s26, %s76_s26 }
  0x31   :  { %p2131_p6 = scmp.ne.s32.totalorder %s76_s26, %s2130_s0  ;;  %p2136_p8 = scmp.lt.s32.totalorder %s2130_s0, %s2130_s0 }
  0x33   :  { %p2137_p9 = por %p2136_p8, %p2135_p7 }
  0x35   :  { %p2138_p10 = pnand %p2137_p9, %p2131_p6 }
  0x37   :  { %2141 = shalt.err (!%p2138_p10)
}
  0x38   :  { %81 = dma.hbm_to_vmem [thread:$0]  %s2484_s5, 512, %s76_s26, [#allocation9], %s2216_s10, %s2216_s10, %s2217_s11  }
  0x39   :  { %s2150_s3 = scalar_lea.vmem %s88_s28, 512  ;;  %p2155_p12 = scmp.lt.s32.totalorder %s88_s28, %s88_s28 }
  0x3a   :  { %p2151_p11 = scmp.ne.s32.totalorder %s88_s28, %s2150_s3  ;;  %p2156_p13 = scmp.lt.s32.totalorder %s2150_s3, %s2150_s3 }
  0x3c   :  { %p2157_p0 = por %p2156_p13, %p2155_p12 }
  0x3e   :  { %p2158_p1 = pnand %p2157_p0, %p2151_p11 }
  0x40   :  { %2161 = shalt.err (!%p2158_p1)
}
  0x41   :  { %93 = dma.hbm_to_vmem [thread:$0]  %s2485_s6, 512, %s88_s28, [#allocation12], %s2216_s10, %s2216_s10, %s2217_s11  }
  0x42   :  { %2202 = dma.done.wait [#allocation3], 256  }
  0x43   :  { %2203 = vsyncadd [#allocation3], 4294967040 }
  0x44   :  { %2204 = dma.done.wait [#allocation6], 512  }
  0x45   :  { %2205 = vsyncadd [#allocation6], 4294966784 }
  0x46   :  { %2206 = dma.done.wait [#allocation9], 1024  }
  0x47   :  { %2207 = vsyncadd [#allocation9], 4294966272 }
  0x48   :  { %2208 = dma.done.wait [#allocation12], 512  }
  0x49   :  { %2209 = vsyncadd [#allocation12], 4294966784  ;;  %v112_v0 = vld [vmem:[#allocation2] sm:$0xff]  ;;  %v114_v1 = vld [vmem:[#allocation5] sm:$0xff]  ;;  %vm118_vm0 = vcmask 261120   ;;  %v2222_v20 = vmov 0.0  }
  0x4a   :  { %v113_v2 = vld [vmem:[#allocation2 + $0x8] sm:$0xff]  ;;  %v116_v3 = vadd.f32 %v114_v1, %v112_v0  ;;  %v115_v4 = vld [vmem:[#allocation5 + $0x8] sm:$0xff]  ;;  %v236_v11 = vld [vmem:[#allocation10 + $0x10] sm:$0xff]  ;;  %vm319_vm1 = vcmask 64512   ;;  %vm2223_vm2 = vmmov 0   ;;  %s2225_s13 = smov 120  }
  0x4b   :  { %v117_v5 = vadd.f32 %v115_v4, %v113_v2  ;;  %v237_v10 = vld [vmem:[#allocation10 + $0x18] sm:$0xff]  ;;  %v147_v13 = vld [vmem:[#allocation7] sm:$0xff]  ;;  %v235_v14 = vld [vmem:[#allocation10 + $0x8] sm:$0xff]  ;;  %s2226_s14 = smov 88   ;;  %s2227_s15 = smov 112   ;;  %vm1665_vm3 = vcmask 195584  }
  0x4c   :  { %v121_v6 = vmul.f32 %v116_v3, %v116_v3  ;;  %119 = vst.msk [vmem:[#allocation14] sm:$0xff] %vm118_vm0, %v116_v3  ;;  %1883 = vmatprep.subr.mxu1 %v237_v10  ;;  %v152_v12 = vld [vmem:[#allocation8 + $0x18] sm:$0xff]  ;;  %v151_v15 = vld [vmem:[#allocation8 + $0x10] sm:$0xff]  ;;  %v234_v16 = vld [vmem:[#allocation10] sm:$0xff]  ;;  %1891 = vmatprep.mubr.msk.f32.mxu1 %vm118_vm0, %v147_v13  ;;  %s2228_s16 = smov 80   ;;  %s2229_s17 = smov 104  }
  0x4d   :  { %v122_v7 = vmul.f32 %v117_v5, %v117_v5  ;;  %120 = vst.msk [vmem:[#allocation14 + $0x8] sm:$0xff] %vm118_vm0, %v117_v5  ;;  %1884 = vmatpush3.msra.mxu1 %v237_v10  ;;  %1872 = vmatprep.subr.mxu0 %v152_v12  ;;  %v150_v17 = vld [vmem:[#allocation8 + $0x8] sm:$0xff]  ;;  %v148_v18 = vld [vmem:[#allocation7 + $0x8] sm:$0xff]  ;;  %v149_v19 = vld [vmem:[#allocation8] sm:$0xff]  ;;  %s2230_s18 = smov 72   ;;  %s2231_s19 = smov 16  }
  0x4e   :  { %v123_v8 = vsel %vm118_vm0, %v121_v6, 0.0  ;;  %1885 = vmatprep.subr.mxu1 %v236_v11  ;;  %1873 = vmatpush3.msra.mxu0 %v152_v12  ;;  %v1791_v28 = vld [vmem:[%s2481_s2] ss:$0 sm:$0xff]  ;;  %s2224_s2 = smov 96   ;;  %s2232_s20 = smov 24   ;;  %vm1662_vm4 = vcmask 130048  }
  0x4f   :  { %124 = vadd.xlane.f32.xlu0 %v123_v8  ;;  %v126_v9 = vsel %vm118_vm0, %v122_v7, 0.0  ;;  %1886 = vmatpush3.msra.mxu1 %v236_v11  ;;  %s2233_s1 = smov [#allocation14]  }
  0x50   :  { %1887 = vmatprep.subr.mxu1 %v235_v14  ;;  %1874 = vmatprep.subr.mxu0 %v151_v15  ;;  %s1772_s21 = sshll.u32 %s2233_s1, 4  ;;  %s1773_s21 = int_to_ptr.vmem [resolvable:$true] %s1772_s21 }
  0x51   :  { %1888 = vmatpush3.msra.mxu1 %v235_v14  ;;  %1875 = vmatpush3.msra.mxu0 %v151_v15  ;;  %s2162_s22 = scalar_lea.vmem %s1773_s21, 256  ;;  %p2167_p3 = scmp.lt.s32.totalorder %s1773_s21, %s1773_s21 }
  0x52   :  { %1889 = vmatprep.subr.mxu1 %v234_v16  ;;  %1876 = vmatprep.subr.mxu0 %v150_v17  ;;  %p2163_p2 = scmp.ne.s32.totalorder %s1773_s21, %s2162_s22  ;;  %p2168_p4 = scmp.lt.s32.totalorder %s2162_s22, %s2162_s22 }
  0x53   :  { %127 = vadd.xlane.f32.xlu0 %v126_v9  ;;  %1890 = vmatpush3.msra.mxu1 %v234_v16 }
  0x54   :  { %1877 = vmatpush3.msra.mxu0 %v150_v17  ;;  %1892 = vmatmul.mubr.msk.f32.vlgmr.msra.gmra.mxu1 %vm118_vm0, %v148_v18  ;;  %p2169_p5 = por %p2168_p4, %p2167_p3 }
  0x55   :  { %1878 = vmatprep.subr.mxu0 %v149_v19  ;;  %1894 = vmatprep.subr.mxu1 %v2222_v20 }
  0x56   :  { %1879 = vmatpush3.msra.mxu0 %v149_v19  ;;  %1896 = vmatprep.mubr.msk.f32.mxu1 %vm2223_vm2, %v2222_v20  ;;  %p2170_p6 = pnand %p2169_p5, %p2163_p2 }
  0x57   :  { %1904 = vmatprep.subr.mxu0 %v2222_v20 }
  0xd8   :  { %v125_v21 = vpop.xlane.xlu0 %124 }
  0xd9   :  { %v130_v22 = vmul.f32 0.03125, %v125_v21 }
  0xdb   :  { %v132_v23 = vadd.f32 1e-05, %v130_v22 }
  0xdc   :  { %v128_v24 = vpop.xlane.xlu0 %127 }
  0xdd   :  { %2006 = vrsqrt.f32 %v132_v23  ;;  %v131_v25 = vmul.f32 0.03125, %v128_v24 }
  0xdf   :  { %v133_v26 = vadd.f32 1e-05, %v131_v25 }
  0xe1   :  { %2008 = vrsqrt.f32 %v133_v26 }
  0xea   :  { %v2007_v27 = vpop.eup %2006 }
  0xeb   :  { %v136_v29 = vmul.f32 %v2007_v27, %v116_v3 }
  0xed   :  { %v145_v30 = vmul.f32 %v1791_v28, %v136_v29 }
  0xee   :  { %v2009_v31 = vpop.eup %2008 }
  0xef   :  { %v137_v32 = vmul.f32 %v2009_v31, %v117_v5  ;;  %1880 = vmatprep.mubr.msk.f32.mxu0 %vm118_vm0, %v145_v30 }
  0xf1   :  { %v146_v33 = vmul.f32 %v1791_v28, %v137_v32 }
  0xf3   :  { %1881 = vmatmul.mubr.msk.f32.vlgmr.msra.gmra.mxu0 %vm118_vm0, %v146_v33 }
  0xf4   :  { %1906 = vmatprep.mubr.msk.f32.mxu0 %vm2223_vm2, %v2222_v20 }
 0x114   :  { %v2329_v34 = vpop.f32.mrf.mxu1 }
 0x116   :  { %v2331_v35 = vpop.f32.mrf.mxu1 }
 0x117   :  { %1895 = vmatpush3.xpose.msk.msra.mxu1 %vm319_vm1, %v2331_v35 }
 0x118   :  { %1899 = vmatprep.subr.mxu1 %v2222_v20 }
 0x1b3   :  { %v2340_v36 = vpop.f32.mrf.mxu0 }
 0x1b5   :  { %v2342_v37 = vpop.f32.mrf.mxu0 }
 0x1b6   :  { %1897 = vmatmul.mubr.msk.f32.vlgmr.msra.gmra.mxu1 %vm319_vm1, %v2342_v37 }
 0x1b7   :  { %1900 = vmatpush3.xpose.msk.msra.mxu1 %vm319_vm1, %v2329_v34  ;;  %1901 = vmatprep.mubr.msk.f32.mxu1 %vm2223_vm2, %v2222_v20 }
 0x1b8   :  { %1909 = vmatprep.subr.mxu1 %v2222_v20 }
 0x1ba   :  { %1902 = vmatmul.mubr.msk.f32.vlgmr.msra.gmra.mxu1 %vm319_vm1, %v2340_v36 }
 0x1bb   :  { %1911 = vmatprep.mubr.msk.f32.mxu1 %vm2223_vm2, %v2222_v20 }
 0x276   :  { %v392_v38 = vpop.f32.mrf.mxu1 }
 0x277   :  { %v472_v39 = vsel %vm319_vm1, %v392_v38, -inf }
 0x278   :  { %473 = vmax.xlane.f32.xlu1 %v472_v39  ;;  %v1898_v40 = vpop.f32.mrf.mxu1 }
 0x27a   :  { %v468_v41 = vpop.f32.mrf.mxu1 }
 0x27b   :  { %v475_v42 = vsel %vm319_vm1, %v468_v41, -inf }
 0x27c   :  { %476 = vmax.xlane.f32.xlu1 %v475_v42  ;;  %v1903_v43 = vpop.f32.mrf.mxu1 }
 0x28d   :  { %570 = vrot.lane.b32.xlu1 %v2329_v34, %s2224_s2 }
 0x291   :  { %648 = vrot.lane.b32.xlu1 %v2331_v35, %s2225_s13 }
 0x295   :  { %726 = vrot.lane.b32.xlu1 %v2329_v34, %s2225_s13 }
 0x301   :  { %v474_v44 = vpop.xlane.xlu1 %473 }
 0x302   :  { %v478_v45 = vsub.f32 %v392_v38, %v474_v44 }
 0x304   :  { %v480_v46 = vmul.f32 1.442695, %v478_v45 }
 0x305   :  { %v477_v47 = vpop.xlane.xlu1 %476 }
 0x306   :  { %2010 = vpow2.f32 %v480_v46  ;;  %v479_v48 = vsub.f32 %v468_v41, %v477_v47 }
 0x308   :  { %v482_v49 = vmul.f32 1.442695, %v479_v48 }
 0x309   :  { %v571_v50 = vpop.permute.xlu1 %570 }
 0x30a   :  { %2012 = vpow2.f32 %v482_v49  ;;  %1910 = vmatpush3.msra.mxu1 %v571_v50 }
 0x30b   :  { %1919 = vmatprep.subr.mxu1 %v2222_v20 }
 0x30d   :  { %v649_v55 = vpop.permute.xlu1 %648 }
 0x311   :  { %v727_v56 = vpop.permute.xlu1 %726 }
 0x313   :  { %v2011_v51 = vpop.eup %2010 }
 0x314   :  { %v484_v52 = vsel %vm319_vm1, %v2011_v51, 0.0 }
 0x315   :  { %485 = vadd.xlane.f32.xlu0 %v484_v52 }
 0x317   :  { %v2013_v53 = vpop.eup %2012 }
 0x318   :  { %v487_v54 = vsel %vm319_vm1, %v2013_v53, 0.0 }
 0x319   :  { %488 = vadd.xlane.f32.xlu1 %v487_v54 }
 0x32a   :  { %724 = vrot.lane.b32.xlu1 %v2340_v36, %s2225_s13 }
 0x32b   :  { %494 = vrot.lane.b32.xlu0 %v2331_v35, %s2224_s2 }
 0x32f   :  { %646 = vrot.lane.b32.xlu0 %v2342_v37, %s2225_s13 }
 0x39e   :  { %v486_v57 = vpop.xlane.xlu0 %485 }
 0x39f   :  { %2014 = vrcp.f32 %v486_v57 }
 0x3a2   :  { %v495_v58 = vpop.permute.xlu0 %494  ;;  %v489_v59 = vpop.xlane.xlu1 %488 }
 0x3a3   :  { %2016 = vrcp.f32 %v489_v59  ;;  %1905 = vmatpush3.msra.mxu0 %v495_v58 }
 0x3a4   :  { %1914 = vmatprep.subr.mxu0 %v2222_v20 }
 0x3a6   :  { %v647_v0 = vpop.permute.xlu0 %646  ;;  %v725_v1 = vpop.permute.xlu1 %724 }
 0x3ac   :  { %v2015_v60 = vpop.eup %2014 }
 0x3ad   :  { %v492_v61 = vmul.f32 %v2015_v60, %v2011_v51 }
 0x3af   :  { %1907 = vmatmul.mubr.msk.f32.vlgmr.msra.gmra.mxu0 %vm319_vm1, %v492_v61 }
 0x3b0   :  { %v2017_v62 = vpop.eup %2016  ;;  %1915 = vmatpush3.xpose.msk.msra.mxu0 %vm319_vm1, %v649_v55  ;;  %1916 = vmatprep.mubr.msk.f32.mxu0 %vm2223_vm2, %v2222_v20 }
 0x3b1   :  { %v493_v63 = vmul.f32 %v2017_v62, %v2013_v53  ;;  %1924 = vmatprep.subr.mxu0 %v2222_v20 }
 0x3b3   :  { %1912 = vmatmul.mubr.msk.f32.vlgmr.msra.gmra.mxu1 %vm319_vm1, %v493_v63  ;;  %1917 = vmatmul.mubr.msk.f32.vlgmr.msra.gmra.mxu0 %vm319_vm1, %v647_v0 }
 0x3b4   :  { %1920 = vmatpush3.xpose.msk.msra.mxu1 %vm319_vm1, %v727_v56  ;;  %1921 = vmatprep.mubr.msk.f32.mxu1 %vm2223_vm2, %v2222_v20 }
 0x3b5   :  { %1929 = vmatprep.subr.mxu1 %v2222_v20  ;;  %1926 = vmatprep.mubr.msk.f32.mxu0 %vm2223_vm2, %v2222_v20 }
 0x3b7   :  { %1922 = vmatmul.mubr.msk.f32.vlgmr.msra.gmra.mxu1 %vm319_vm1, %v725_v1 }
 0x3b8   :  { %1931 = vmatprep.mubr.msk.f32.mxu1 %vm2223_vm2, %v2222_v20 }
 0x46f   :  { %v2383_v2 = vpop.f32.mrf.mxu0 }
 0x471   :  { %v1908_v3 = vpop.f32.mrf.mxu0 }
 0x473   :  { %v2385_v4 = vpop.f32.mrf.mxu1  ;;  %v720_v5 = vpop.f32.mrf.mxu0 }
 0x474   :  { %v802_v6 = vsel %vm319_vm1, %v720_v5, -inf }
 0x475   :  { %803 = vmax.xlane.f32.xlu0 %v802_v6  ;;  %v1913_v7 = vpop.f32.mrf.mxu1  ;;  %v1918_v8 = vpop.f32.mrf.mxu0 }
 0x477   :  { %v798_v9 = vpop.f32.mrf.mxu1 }
 0x478   :  { %v805_v10 = vsel %vm319_vm1, %v798_v9, -inf }
 0x479   :  { %806 = vmax.xlane.f32.xlu1 %v805_v10  ;;  %v1923_v11 = vpop.f32.mrf.mxu1 }
 0x48a   :  { %900 = vrot.lane.b32.xlu1 %v2329_v34, %s2226_s14 }
 0x48b   :  { %824 = vrot.lane.b32.xlu0 %v2331_v35, %s2226_s14 }
 0x48e   :  { %978 = vrot.lane.b32.xlu1 %v2331_v35, %s2227_s15 }
 0x492   :  { %1056 = vrot.lane.b32.xlu1 %v2329_v34, %s2227_s15 }
 0x496   :  { %1054 = vrot.lane.b32.xlu1 %v2340_v36, %s2227_s15 }
 0x4fe   :  { %v804_v12 = vpop.xlane.xlu0 %803 }
 0x4ff   :  { %v808_v13 = vsub.f32 %v720_v5, %v804_v12 }
 0x501   :  { %v810_v14 = vmul.f32 1.442695, %v808_v13 }
 0x502   :  { %v825_v15 = vpop.permute.xlu0 %824  ;;  %v807_v16 = vpop.xlane.xlu1 %806 }
 0x503   :  { %2018 = vpow2.f32 %v810_v14  ;;  %v809_v17 = vsub.f32 %v798_v9, %v807_v16  ;;  %1925 = vmatpush3.msra.mxu0 %v825_v15 }
 0x504   :  { %1934 = vmatprep.subr.mxu0 %v2222_v20 }
 0x505   :  { %v812_v18 = vmul.f32 1.442695, %v809_v17 }
 0x506   :  { %v901_v19 = vpop.permute.xlu1 %900 }
 0x507   :  { %2020 = vpow2.f32 %v812_v18  ;;  %1930 = vmatpush3.msra.mxu1 %v901_v19 }
 0x508   :  { %1939 = vmatprep.subr.mxu1 %v2222_v20 }
 0x50a   :  { %v979_v27 = vpop.permute.xlu1 %978 }
 0x50e   :  { %v1057_v31 = vpop.permute.xlu1 %1056 }
 0x510   :  { %v2019_v21 = vpop.eup %2018 }
 0x511   :  { %v814_v22 = vsel %vm319_vm1, %v2019_v21, 0.0 }
 0x512   :  { %815 = vadd.xlane.f32.xlu0 %v814_v22  ;;  %v1055_v38 = vpop.permute.xlu1 %1054 }
 0x514   :  { %v2021_v23 = vpop.eup %2020 }
 0x515   :  { %v817_v24 = vsel %vm319_vm1, %v2021_v23, 0.0 }
 0x516   :  { %818 = vadd.xlane.f32.xlu0 %v817_v24 }
 0x52c   :  { %976 = vrot.lane.b32.xlu0 %v2342_v37, %s2227_s15 }
 0x59b   :  { %v816_v25 = vpop.xlane.xlu0 %815 }
 0x59c   :  { %2022 = vrcp.f32 %v816_v25 }
 0x59f   :  { %v819_v26 = vpop.xlane.xlu0 %818 }
 0x5a0   :  { %2024 = vrcp.f32 %v819_v26 }
 0x5a3   :  { %v977_v33 = vpop.permute.xlu0 %976 }
 0x5a9   :  { %v2023_v28 = vpop.eup %2022 }
 0x5aa   :  { %v822_v29 = vmul.f32 %v2023_v28, %v2019_v21 }
 0x5ac   :  { %1927 = vmatmul.mubr.msk.f32.vlgmr.msra.gmra.mxu0 %vm319_vm1, %v822_v29 }
 0x5ad   :  { %v2025_v30 = vpop.eup %2024  ;;  %1935 = vmatpush3.xpose.msk.msra.mxu0 %vm319_vm1, %v979_v27  ;;  %1936 = vmatprep.mubr.msk.f32.mxu0 %vm2223_vm2, %v2222_v20 }
 0x5ae   :  { %v823_v32 = vmul.f32 %v2025_v30, %v2021_v23  ;;  %1944 = vmatprep.subr.mxu0 %v2222_v20 }
 0x5b0   :  { %1932 = vmatmul.mubr.msk.f32.vlgmr.msra.gmra.mxu1 %vm319_vm1, %v823_v32  ;;  %1937 = vmatmul.mubr.msk.f32.vlgmr.msra.gmra.mxu0 %vm319_vm1, %v977_v33 }
 0x5b1   :  { %1940 = vmatpush3.xpose.msk.msra.mxu1 %vm319_vm1, %v1057_v31  ;;  %1941 = vmatprep.mubr.msk.f32.mxu1 %vm2223_vm2, %v2222_v20 }
 0x5b2   :  { %1949 = vmatprep.subr.mxu1 %v2222_v20  ;;  %1946 = vmatprep.mubr.msk.f32.mxu0 %vm2223_vm2, %v2222_v20 }
 0x5b4   :  { %1942 = vmatmul.mubr.msk.f32.vlgmr.msra.gmra.mxu1 %vm319_vm1, %v1055_v38  ;;  %v1671_v38 = vld [vmem:[#allocation11 + $0x18] sm:$0xff] }
 0x5b5   :  { %1951 = vmatprep.mubr.msk.f32.mxu1 %vm2223_vm2, %v2222_v20 }
 0x66c   :  { %v2415_v39 = vpop.f32.mrf.mxu0 }
 0x66e   :  { %v1928_v40 = vpop.f32.mrf.mxu0 }
 0x66f   :  { %v1668_v40 = vld [vmem:[#allocation11] sm:$0xff] }
 0x670   :  { %v2417_v41 = vpop.f32.mrf.mxu1  ;;  %v1050_v42 = vpop.f32.mrf.mxu0 }
 0x671   :  { %v1132_v43 = vsel %vm319_vm1, %v1050_v42, -inf }
 0x672   :  { %1133 = vmax.xlane.f32.xlu0 %v1132_v43  ;;  %v1933_v44 = vpop.f32.mrf.mxu1  ;;  %v1938_v45 = vpop.f32.mrf.mxu0 }
 0x674   :  { %v1128_v46 = vpop.f32.mrf.mxu1 }
 0x675   :  { %v1135_v47 = vsel %vm319_vm1, %v1128_v46, -inf }
 0x676   :  { %1136 = vmax.xlane.f32.xlu1 %v1135_v47  ;;  %v1943_v48 = vpop.f32.mrf.mxu1 }
 0x687   :  { %1230 = vrot.lane.b32.xlu1 %v2329_v34, %s2228_s16 }
 0x688   :  { %1154 = vrot.lane.b32.xlu0 %v2331_v35, %s2228_s16 }
 0x68b   :  { %1308 = vrot.lane.b32.xlu1 %v2331_v35, %s2229_s17 }
 0x68f   :  { %1386 = vrot.lane.b32.xlu1 %v2329_v34, %s2229_s17 }
 0x693   :  { %1384 = vrot.lane.b32.xlu1 %v2340_v36, %s2229_s17 }
 0x6fb   :  { %v1134_v49 = vpop.xlane.xlu0 %1133 }
 0x6fc   :  { %v1138_v50 = vsub.f32 %v1050_v42, %v1134_v49 }
 0x6fe   :  { %v1140_v51 = vmul.f32 1.442695, %v1138_v50 }
 0x6ff   :  { %v1155_v52 = vpop.permute.xlu0 %1154  ;;  %v1137_v53 = vpop.xlane.xlu1 %1136 }
 0x700   :  { %2026 = vpow2.f32 %v1140_v51  ;;  %v1139_v54 = vsub.f32 %v1128_v46, %v1137_v53  ;;  %1945 = vmatpush3.msra.mxu0 %v1155_v52 }
 0x701   :  { %1954 = vmatprep.subr.mxu0 %v2222_v20 }
 0x702   :  { %v1142_v55 = vmul.f32 1.442695, %v1139_v54 }
 0x703   :  { %v1231_v56 = vpop.permute.xlu1 %1230 }
 0x704   :  { %2028 = vpow2.f32 %v1142_v55  ;;  %1950 = vmatpush3.msra.mxu1 %v1231_v56 }
 0x705   :  { %1959 = vmatprep.subr.mxu1 %v2222_v20 }
 0x707   :  { %v1309_v62 = vpop.permute.xlu1 %1308 }
 0x70b   :  { %v1387_v3 = vpop.permute.xlu1 %1386 }
 0x70d   :  { %v2027_v57 = vpop.eup %2026 }
 0x70e   :  { %v1144_v58 = vsel %vm319_vm1, %v2027_v57, 0.0 }
 0x70f   :  { %1145 = vadd.xlane.f32.xlu0 %v1144_v58  ;;  %v1385_v6 = vpop.permute.xlu1 %1384 }
 0x711   :  { %v2029_v36 = vpop.eup %2028 }
 0x712   :  { %v1147_v59 = vsel %vm319_vm1, %v2029_v36, 0.0 }
 0x713   :  { %1148 = vadd.xlane.f32.xlu0 %v1147_v59 }
 0x729   :  { %1306 = vrot.lane.b32.xlu0 %v2342_v37, %s2229_s17 }
 0x798   :  { %v1146_v60 = vpop.xlane.xlu0 %1145 }
 0x799   :  { %2030 = vrcp.f32 %v1146_v60 }
 0x79c   :  { %v1149_v61 = vpop.xlane.xlu0 %1148 }
 0x79d   :  { %2032 = vrcp.f32 %v1149_v61 }
 0x7a0   :  { %v1307_v37 = vpop.permute.xlu0 %1306 }
 0x7a6   :  { %v2031_v63 = vpop.eup %2030 }
 0x7a7   :  { %v1152_v0 = vmul.f32 %v2031_v63, %v2027_v57 }
 0x7a9   :  { %1947 = vmatmul.mubr.msk.f32.vlgmr.msra.gmra.mxu0 %vm319_vm1, %v1152_v0 }
 0x7aa   :  { %v2033_v1 = vpop.eup %2032  ;;  %1955 = vmatpush3.xpose.msk.msra.mxu0 %vm319_vm1, %v1309_v62  ;;  %1956 = vmatprep.mubr.msk.f32.mxu0 %vm2223_vm2, %v2222_v20 }
 0x7ab   :  { %v1153_v5 = vmul.f32 %v2033_v1, %v2029_v36  ;;  %1964 = vmatprep.subr.mxu0 %v2222_v20 }
 0x7ad   :  { %1952 = vmatmul.mubr.msk.f32.vlgmr.msra.gmra.mxu1 %vm319_vm1, %v1153_v5  ;;  %1957 = vmatmul.mubr.msk.f32.vlgmr.msra.gmra.mxu0 %vm319_vm1, %v1307_v37 }
 0x7ae   :  { %1960 = vmatpush3.xpose.msk.msra.mxu1 %vm319_vm1, %v1387_v3  ;;  %1961 = vmatprep.mubr.msk.f32.mxu1 %vm2223_vm2, %v2222_v20 }
 0x7af   :  { %1969 = vmatprep.subr.mxu1 %v2222_v20  ;;  %1966 = vmatprep.mubr.msk.f32.mxu0 %vm2223_vm2, %v2222_v20 }
 0x7b1   :  { %1962 = vmatmul.mubr.msk.f32.vlgmr.msra.gmra.mxu1 %vm319_vm1, %v1385_v6 }
 0x7b2   :  { %1971 = vmatprep.mubr.msk.f32.mxu1 %vm2223_vm2, %v2222_v20 }
 0x869   :  { %v1226_v7 = vpop.f32.mrf.mxu0 }
 0x86b   :  { %v1948_v8 = vpop.f32.mrf.mxu0 }
 0x86d   :  { %v1302_v9 = vpop.f32.mrf.mxu1  ;;  %v1380_v10 = vpop.f32.mrf.mxu0 }
 0x86e   :  { %v1462_v11 = vsel %vm319_vm1, %v1380_v10, -inf }
 0x86f   :  { %1463 = vmax.xlane.f32.xlu0 %v1462_v11  ;;  %v1953_v12 = vpop.f32.mrf.mxu1  ;;  %v1958_v13 = vpop.f32.mrf.mxu0 }
 0x871   :  { %v1458_v14 = vpop.f32.mrf.mxu1 }
 0x872   :  { %v1465_v15 = vsel %vm319_vm1, %v1458_v14, -inf }
 0x873   :  { %1466 = vmax.xlane.f32.xlu1 %v1465_v15  ;;  %v1963_v16 = vpop.f32.mrf.mxu1 }
 0x884   :  { %1560 = vrot.lane.b32.xlu1 %v2329_v34, %s2230_s18 }
 0x888   :  { %1638 = vrot.lane.b32.xlu1 %v2415_v39, %s2217_s11  ;;  %v1670_v39 = vld [vmem:[#allocation11 + $0x10] sm:$0xff] }
 0x88c   :  { %1640 = vrot.lane.b32.xlu1 %v2417_v41, %s2217_s11 }
 0x890   :  { %1648 = vrot.lane.b32.xlu1 %v1302_v9, %s2231_s19 }
 0x8f8   :  { %v1464_v20 = vpop.xlane.xlu0 %1463 }
 0x8f9   :  { %v1468_v17 = vsub.f32 %v1380_v10, %v1464_v20 }
 0x8fb   :  { %v1470_v18 = vmul.f32 1.442695, %v1468_v17 }
 0x8fc   :  { %v1467_v19 = vpop.xlane.xlu1 %1466 }
 0x8fd   :  { %2034 = vpow2.f32 %v1470_v18  ;;  %v1469_v21 = vsub.f32 %v1458_v14, %v1467_v19 }
 0x8ff   :  { %v1472_v22 = vmul.f32 1.442695, %v1469_v21 }
 0x900   :  { %v1561_v23 = vpop.permute.xlu1 %1560 }
 0x901   :  { %2036 = vpow2.f32 %v1472_v22  ;;  %1970 = vmatpush3.msra.mxu1 %v1561_v23 }
 0x904   :  { %v1639_v45 = vpop.permute.xlu1 %1638 }
 0x905   :  { %v1660_v48 = vsel %vm319_vm1, %v2383_v2, %v1639_v45 }
 0x908   :  { %v1641_v46 = vpop.permute.xlu1 %1640 }
 0x909   :  { %v1661_v53 = vsel %vm319_vm1, %v2385_v4, %v1641_v46 }
 0x90a   :  { %v2035_v24 = vpop.eup %2034 }
 0x90b   :  { %v1474_v34 = vsel %vm319_vm1, %v2035_v24, 0.0 }
 0x90c   :  { %1475 = vadd.xlane.f32.xlu0 %v1474_v34  ;;  %v1649_v49 = vpop.permute.xlu1 %1648 }
 0x90d   :  { %v1664_v54 = vsel %vm1662_vm4, %v1661_v53, %v1649_v49 }
 0x90e   :  { %v2037_v25 = vpop.eup %2036 }
 0x90f   :  { %v1477_v26 = vsel %vm319_vm1, %v2037_v25, 0.0 }
 0x910   :  { %1478 = vadd.xlane.f32.xlu0 %v1477_v26 }
 0x926   :  { %1484 = vrot.lane.b32.xlu0 %v2331_v35, %s2230_s18  ;;  %v1669_v35 = vld [vmem:[#allocation11 + $0x8] sm:$0xff] }
 0x92a   :  { %1646 = vrot.lane.b32.xlu0 %v1226_v7, %s2231_s19 }
 0x995   :  { %v1476_v27 = vpop.xlane.xlu0 %1475 }
 0x996   :  { %2038 = vrcp.f32 %v1476_v27 }
 0x999   :  { %v1479_v28 = vpop.xlane.xlu0 %1478 }
 0x99a   :  { %2040 = vrcp.f32 %v1479_v28 }
 0x99d   :  { %v1485_v29 = vpop.permute.xlu0 %1484 }
 0x99e   :  { %1965 = vmatpush3.msra.mxu0 %v1485_v29 }
 0x99f   :  { %1974 = vmatprep.subr.mxu0 %v1671_v38 }
 0x9a1   :  { %v1647_v47 = vpop.permute.xlu0 %1646 }
 0x9a2   :  { %v1663_v50 = vsel %vm1662_vm4, %v1660_v48, %v1647_v47 }
 0x9a3   :  { %v2039_v30 = vpop.eup %2038 }
 0x9a4   :  { %v1482_v31 = vmul.f32 %v2039_v30, %v2035_v24 }
 0x9a6   :  { %1967 = vmatmul.mubr.msk.f32.vlgmr.msra.gmra.mxu0 %vm319_vm1, %v1482_v31 }
 0x9a7   :  { %v2041_v32 = vpop.eup %2040  ;;  %1975 = vmatpush3.msra.mxu0 %v1671_v38 }
 0x9a8   :  { %v1483_v33 = vmul.f32 %v2041_v32, %v2037_v25  ;;  %1976 = vmatprep.subr.mxu0 %v1670_v39 }
 0x9a9   :  { %1977 = vmatpush3.msra.mxu0 %v1670_v39 }
 0x9aa   :  { %1972 = vmatmul.mubr.msk.f32.vlgmr.msra.gmra.mxu1 %vm319_vm1, %v1483_v33  ;;  %1978 = vmatprep.subr.mxu0 %v1669_v35 }
 0x9ab   :  { %1979 = vmatpush3.msra.mxu0 %v1669_v35 }
 0x9ac   :  { %1980 = vmatprep.subr.mxu0 %v1668_v40 }
 0x9ad   :  { %1981 = vmatpush3.msra.mxu0 %v1668_v40 }
 0xa66   :  { %v1556_v41 = vpop.f32.mrf.mxu0 }
 0xa67   :  { %1654 = vrot.lane.b32.xlu0 %v1556_v41, %s2232_s20 }
 0xa68   :  { %v1968_v42 = vpop.f32.mrf.mxu0 }
 0xa6a   :  { %v1632_v43 = vpop.f32.mrf.mxu1 }
 0xa6b   :  { %1656 = vrot.lane.b32.xlu1 %v1632_v43, %s2232_s20 }
 0xa6c   :  { %v1973_v44 = vpop.f32.mrf.mxu1 }
 0xad9   :  { %v1655_v51 = vpop.permute.xlu0 %1654 }
 0xada   :  { %v1666_v52 = vsel %vm1665_vm3, %v1663_v50, %v1655_v51 }
 0xadb   :  { %1982 = vmatprep.mubr.msk.f32.mxu0 %vm118_vm0, %v1666_v52 }
 0xadd   :  { %v1657_v55 = vpop.permute.xlu1 %1656 }
 0xade   :  { %v1667_v56 = vsel %vm1665_vm3, %v1664_v54, %v1657_v55 }
 0xadf   :  { %1983 = vmatmul.mubr.msk.f32.vlgmr.msra.gmra.mxu0 %vm118_vm0, %v1667_v56 }
 0xae0   :  { %2173 = shalt.err (!%p2170_p6)
}
 0xae1   :  { %1778 = dma.vmem_to_hbm [thread:$0]  %s1773_s21, 256, %s2487_s8, [#allocation15], %s2216_s10, %s2216_s10, %s2217_s11  }
 0xae2   :  { %s2234_s24 = smov [#allocation13]  }
 0xae3   :  { %s1760_s25 = sshll.u32 %s2234_s24, 4  ;;  %s1761_s25 = int_to_ptr.vmem [resolvable:$true] %s1760_s25 }
 0xae4   :  { %s2182_s26 = scalar_lea.vmem %s1761_s25, 256  ;;  %p2187_p8 = scmp.lt.s32.totalorder %s1761_s25, %s1761_s25 }
 0xae5   :  { %p2183_p7 = scmp.ne.s32.totalorder %s1761_s25, %s2182_s26  ;;  %p2188_p9 = scmp.lt.s32.totalorder %s2182_s26, %s2182_s26 }
 0xae7   :  { %p2189_p10 = por %p2188_p9, %p2187_p8 }
 0xae9   :  { %p2190_p11 = pnand %p2189_p10, %p2183_p7 }
 0xb9f   :  { %v1984_v2 = vpop.f32.mrf.mxu0 }
 0xba0   :  { %1754 = vst.msk [vmem:[#allocation13 + $0x8] sm:$0xff] %vm118_vm0, %v1984_v2 }
 0xba1   :  { %v1744_v4 = vpop.f32.mrf.mxu0 }
 0xba2   :  { %1753 = vst.msk [vmem:[#allocation13] sm:$0xff] %vm118_vm0, %v1744_v4 }
 0xba3   :  { %2193 = shalt.err (!%p2190_p11)
}
 0xba4   :  { %1766 = dma.vmem_to_hbm [thread:$0]  %s1761_s25, 256, %s2486_s7, [#allocation4], %s2216_s10, %s2216_s10, %s2217_s11  }
 0xba5   :  { %2210 = dma.done.wait [#allocation4], 256  }
 0xba6   :  { %2211 = vsyncadd [#allocation4], 4294967040 }
 0xba7   :  { %2212 = dma.done.wait [#allocation15], 256  }
 0xba8   :  { %2213 = vsyncadd [#allocation15], 4294967040 }
 0xba9   :  { %1785 = vsyncpa [#allocation3], 1 }
 0xbaa   :  { %1786 = vsyncpa [#allocation6], 1 }
 0xbab   :  { %1787 = vsyncpa [#allocation9], 1 }
 0xbac   :  { %1788 = vsyncpa [#allocation12], 1 }
 0xbad   :  { %1789 = vsyncpa [#allocation4], 1 }
 0xbae   :  { %1790 = vsyncpa [#allocation15], 1 }

</bundles_post_ra>
